<compile_context>
chip_gen: v6e
topology: v6e:2x2x1
jax: 0.10.0
libtpu: 0.0.40
codegen_flags: <defaults>
</compile_context>

<pallas_src>
import functools
import math

import jax
import jax.numpy as jnp
from jax import lax
from jax.experimental import pallas as pl
from jax.experimental.pallas import tpu as pltpu


def _constantmax_kernel(x_ref, o_ref, *, k, d, log2_constant, subtract_max):
    """out = 2**(x - rowmax) / constant == exp2(x - rowmax - log2(constant)).

    For the lane-packed path (k > 1) each 128-lane row of the block holds k
    logical rows of d contiguous lanes, so "rowmax" is a segmented max over
    aligned groups of d lanes, computed with a 2-roll-per-level butterfly
    whose select masks come from one hoisted iota (no runtime seg_id rolls,
    no -inf fills).
    """
    x = x_ref[...].astype(jnp.float32)                     # (tile_m, L)

    if not subtract_max:
        o_ref[...] = jnp.exp2(x - log2_constant).astype(o_ref.dtype)
        return

    if k == 1:
        # Plain per-row max over the lane axis (single XLU reduction);
        # log2(constant) folded into the narrow (tile_m, 1) max.
        m = jnp.max(x, axis=-1, keepdims=True) + log2_constant
        o_ref[...] = jnp.exp2(x - m).astype(o_ref.dtype)
        return

    L = k * d
    # Hoisted once: lane position within its segment (small ints, exact).
    lane_in_seg = lax.broadcasted_iota(jnp.int32, x.shape, 1) % d
    # Segmented max over aligned groups of d contiguous lanes (d is a power
    # of two by construction).  At each level s the two full-row rolls
    # reconstruct an exact within-segment cyclic rotation by s
    # (pltpu.roll == jnp.roll: out[j] = in[(j - shift) % L]):
    #   roll(y, L - s)[j] = y[(j + s)     % L]   -> take when p <  d - s
    #   roll(y, d - s)[j] = y[(j + s - d) % L]   -> take when p >= d - s
    # After levels s = 1, 2, ..., d/2 every lane holds its segment's max.
    y = x
    s = 1
    while s < d:
        z_fwd = pltpu.roll(y, shift=L - s, axis=1)
        z_bwd = pltpu.roll(y, shift=d - s, axis=1)
        y = jnp.maximum(y, jnp.where(lane_in_seg < (d - s), z_fwd, z_bwd))
        s *= 2
    o_ref[...] = jnp.exp2(x - y - log2_constant).astype(o_ref.dtype)


def _vmem_capacity_bytes():
    try:
        return int(pltpu.get_tpu_info().vmem_capacity_bytes)
    except Exception:
        return 64 * 1024 * 1024          # conservative (v7x-sized) fallback


def _choose_tiling(num_rows, row_elems, itemsize):
    """Pick (tile_m, vmem_limit_bytes) for (tile_m, row_elems) blocks."""
    vmem_cap = _vmem_capacity_bytes()
    row_bytes = row_elems * itemsize
    total_bytes = num_rows * row_bytes
    sub = max(8, 32 // itemsize)         # sublane granularity: f32->8, bf16->16

    # Per-block byte target derived from VMEM: (in + out) blocks, each
    # double-buffered, must stay well under the scoped limit on every
    # generation (v7x: 64 MiB physical / 32 MiB scoped).  ~2-4 MiB blocks
    # amortize the ~0.35 us per-grid-step overhead even at v7x HBM speed.
    pipeline_budget = min(vmem_cap // 4, 16 * 1024 * 1024)
    block_bytes = pipeline_budget // 4                     # 4 pipeline buffers
    tile_m = max(sub, (block_bytes // row_bytes // sub) * sub)

    # Keep a few grid steps alive (megacore split on v7x + DMA pipelining),
    # but only while each step still moves >= ~1 MiB; small problems run as
    # one full-extent block so the per-step overhead is not multiplied.
    MIB = 1024 * 1024
    if total_bytes >= 4 * MIB:
        min_steps = 4
    elif total_bytes >= 2 * MIB:
        min_steps = 2
    else:
        min_steps = 1
    if min_steps > 1:
        step_cap = pl.cdiv(pl.cdiv(num_rows, min_steps), sub) * sub
        tile_m = min(tile_m, max(sub, step_cap))
    if min_steps == 1 or tile_m >= num_rows:
        tile_m = num_rows                # full-extent block is always legal
    # NOTE: rows so large that even `sub` rows x 4 buffers exceed VMEM would
    # need a D-tiled two-pass (running max) variant; not needed here.
    vmem_limit = int(min(vmem_cap // 2, 64 * 1024 * 1024))
    return int(tile_m), vmem_limit


def constantmax(x, *, dim=-1, subtract_max=True, constant=1000.0):
    """Pallas TPU implementation of Constantmax.forward."""
    ndim = x.ndim
    axis = dim % ndim
    if axis != ndim - 1:
        # Module default is dim=-1; other dims handled by a wrapper transpose.
        x = jnp.moveaxis(x, axis, -1)
    orig_shape = x.shape
    D = orig_shape[-1]
    M = 1
    for s in orig_shape[:-1]:
        M *= s

    # Lane packing: for D < 128 put k = 128 // D logical rows per 128-lane
    # row (free, contiguous reshape) so loads / stores / exp2 are lane-dense.
    if D < 128 and 128 % D == 0 and M % (128 // D) == 0:
        k = 128 // D                      # D is a power-of-two divisor of 128
    else:
        k = 1
        # TODO(synk): D > 128 that is not a multiple of 128 (e.g. 192) still
        # emits masked partial stores; a wrapper-side pad to a lane multiple
        # would make those shapes lane-dense too.
    L = k * D
    Mp = M // k
    x2 = x.reshape(Mp, L)

    itemsize = jnp.dtype(x.dtype).itemsize
    tile_m, vmem_limit = _choose_tiling(Mp, L, itemsize)

    kernel = functools.partial(
        _constantmax_kernel,
        k=k, d=D,
        log2_constant=float(math.log2(float(constant))),
        subtract_max=bool(subtract_max),
    )

    total = Mp * L
    out2 = pl.pallas_call(
        kernel,
        out_shape=jax.ShapeDtypeStruct((Mp, L), x.dtype),
        grid_spec=pltpu.PrefetchScalarGridSpec(
            num_scalar_prefetch=0,
            grid=(pl.cdiv(Mp, tile_m),),
            in_specs=[pl.BlockSpec((tile_m, L), lambda i: (i, 0))],
            out_specs=pl.BlockSpec((tile_m, L), lambda i: (i, 0)),
        ),
        compiler_params=pltpu.CompilerParams(
            dimension_semantics=("parallel",),
            vmem_limit_bytes=vmem_limit,
        ),
        cost_estimate=pl.CostEstimate(
            flops=3 * total,
            transcendentals=total,
            bytes_accessed=2 * total * itemsize,
        ),
    )(x2)

    out = out2.reshape(orig_shape)
    if axis != ndim - 1:
        out = jnp.moveaxis(out, -1, axis)
    return out


def constantmax_ref(x, dim=-1, subtract_max=True, constant=1000.0):
    xf = x.astype(jnp.float32)
    if subtract_max:
        xf = xf - jnp.max(xf, axis=dim, keepdims=True)
    return (jnp.exp2(xf) / constant).astype(x.dtype)


if __name__ == "__main__":
    key = jax.random.PRNGKey(0)
    k1, k2 = jax.random.split(key)

    # NCHW-like input; Constantmax over the last axis (D=16 < 128 exercises
    # the lane-packed segmented-max path).
    x = jax.random.normal(k1, (2, 4, 16, 16), dtype=jnp.float32)
    out = jax.block_until_ready(constantmax(x))
    ref = constantmax_ref(x)
    assert out.shape == x.shape
    assert jnp.allclose(out, ref, atol=1e-7, rtol=1e-4), "mismatch (packed path)"

    # Wide last dim (k == 1 path) with a row count that is not a multiple of
    # 8 -> exercises the full-extent / plain row-max path.
    y = jax.random.normal(k2, (2, 3, 12, 256), dtype=jnp.float32)
    out_y = jax.block_until_ready(constantmax(y))
    ref_y = constantmax_ref(y)
    assert out_y.shape == y.shape
    assert jnp.allclose(out_y, ref_y, atol=1e-7, rtol=1e-4), "mismatch (wide path)"

    print("KERNEL_OK")
</pallas_src>

<mosaic_0001>
module attributes {stable_mosaic.version = 11 : i64} {
  func.func @_constantmax_kernel(%arg0: i32, %arg1: memref<16x128xf32, #tpu.memory_space<vmem>>, %arg2: memref<16x128xf32, #tpu.memory_space<vmem>>) attributes {dimension_semantics = [#tpu.dimension_semantics<parallel>], iteration_bounds = array<i64: 1>, scalar_prefetch = 0 : i64, scratch_operands = 0 : i64, tpu.core_type = #tpu.core_type<tc>, window_params = [{transform_indices = @transform_0, window_bounds = array<i64: 16, 128>}, {transform_indices = @transform_1, window_bounds = array<i64: 16, 128>}]} {
    %c0 = arith.constant 0 : index
    %c0_0 = arith.constant 0 : index
    %0 = vector.load %arg1[%c0, %c0_0] : memref<16x128xf32, #tpu.memory_space<vmem>>, vector<16x128xf32>
    %1 = tpu.iota {dimensions = array<i32: 1>} : vector<16x128xi32>
    %c16_i32 = arith.constant 16 : i32
    %c0_i32 = arith.constant 0 : i32
    %2 = arith.cmpi eq, %c16_i32, %c0_i32 : i32
    %c1_i32 = arith.constant 1 : i32
    %3 = arith.select %2, %c1_i32, %c16_i32 : i32
    %4 = vector.broadcast %3 : i32 to vector<16x128xi32>
    %5 = arith.remsi %1, %4 : vector<16x128xi32>
    %c0_i32_1 = arith.constant 0 : i32
    %6 = vector.broadcast %c0_i32_1 : i32 to vector<16x128xi32>
    %7 = arith.cmpi ne, %5, %6 : vector<16x128xi32>
    %c0_i32_2 = arith.constant 0 : i32
    %8 = vector.broadcast %c0_i32_2 : i32 to vector<16x128xi32>
    %9 = arith.cmpi slt, %5, %8 : vector<16x128xi32>
    %c0_i32_3 = arith.constant 0 : i32
    %10 = arith.cmpi slt, %3, %c0_i32_3 : i32
    %11 = vector.broadcast %10 : i1 to vector<16x128xi1>
    %12 = vector.broadcast %11 : vector<16x128xi1> to vector<16x128xi1>
    %13 = arith.xori %9, %12 : vector<16x128xi1>
    %14 = arith.andi %13, %7 : vector<16x128xi1>
    %15 = vector.broadcast %3 : i32 to vector<16x128xi32>
    %16 = arith.addi %5, %15 : vector<16x128xi32>
    %17 = arith.select %14, %16, %5 : vector<16x128xi1>, vector<16x128xi32>
    %c127_i32 = arith.constant 127 : i32
    %18 = tpu.dynamic_rotate %0 by %c127_i32 dim 1 : vector<16x128xf32>, i32 -> vector<16x128xf32>
    %c15_i32 = arith.constant 15 : i32
    %19 = tpu.dynamic_rotate %0 by %c15_i32 dim 1 : vector<16x128xf32>, i32 -> vector<16x128xf32>
    %c15_i32_4 = arith.constant 15 : i32
    %20 = vector.broadcast %c15_i32_4 : i32 to vector<16x128xi32>
    %21 = arith.cmpi slt, %17, %20 : vector<16x128xi32>
    %22 = arith.select %21, %18, %19 : vector<16x128xi1>, vector<16x128xf32>
    %23 = arith.maximumf %0, %22 : vector<16x128xf32>
    %c126_i32 = arith.constant 126 : i32
    %24 = tpu.dynamic_rotate %23 by %c126_i32 dim 1 : vector<16x128xf32>, i32 -> vector<16x128xf32>
    %c14_i32 = arith.constant 14 : i32
    %25 = tpu.dynamic_rotate %23 by %c14_i32 dim 1 : vector<16x128xf32>, i32 -> vector<16x128xf32>
    %c14_i32_5 = arith.constant 14 : i32
    %26 = vector.broadcast %c14_i32_5 : i32 to vector<16x128xi32>
    %27 = arith.cmpi slt, %17, %26 : vector<16x128xi32>
    %28 = arith.select %27, %24, %25 : vector<16x128xi1>, vector<16x128xf32>
    %29 = arith.maximumf %23, %28 : vector<16x128xf32>
    %c124_i32 = arith.constant 124 : i32
    %30 = tpu.dynamic_rotate %29 by %c124_i32 dim 1 : vector<16x128xf32>, i32 -> vector<16x128xf32>
    %c12_i32 = arith.constant 12 : i32
    %31 = tpu.dynamic_rotate %29 by %c12_i32 dim 1 : vector<16x128xf32>, i32 -> vector<16x128xf32>
    %c12_i32_6 = arith.constant 12 : i32
    %32 = vector.broadcast %c12_i32_6 : i32 to vector<16x128xi32>
    %33 = arith.cmpi slt, %17, %32 : vector<16x128xi32>
    %34 = arith.select %33, %30, %31 : vector<16x128xi1>, vector<16x128xf32>
    %35 = arith.maximumf %29, %34 : vector<16x128xf32>
    %c120_i32 = arith.constant 120 : i32
    %36 = tpu.dynamic_rotate %35 by %c120_i32 dim 1 : vector<16x128xf32>, i32 -> vector<16x128xf32>
    %c8_i32 = arith.constant 8 : i32
    %37 = tpu.dynamic_rotate %35 by %c8_i32 dim 1 : vector<16x128xf32>, i32 -> vector<16x128xf32>
    %c8_i32_7 = arith.constant 8 : i32
    %38 = vector.broadcast %c8_i32_7 : i32 to vector<16x128xi32>
    %39 = arith.cmpi slt, %17, %38 : vector<16x128xi32>
    %40 = arith.select %39, %36, %37 : vector<16x128xi1>, vector<16x128xf32>
    %41 = arith.maximumf %35, %40 : vector<16x128xf32>
    %42 = arith.subf %0, %41 : vector<16x128xf32>
    %cst = arith.constant 9.96578407 : f32
    %43 = vector.broadcast %cst : f32 to vector<16x128xf32>
    %44 = arith.subf %42, %43 : vector<16x128xf32>
    %45 = math.exp2 %44 : vector<16x128xf32>
    %c0_8 = arith.constant 0 : index
    %c0_9 = arith.constant 0 : index
    %46 = vector.load %arg2[%c0_8, %c0_9] : memref<16x128xf32, #tpu.memory_space<vmem>>, vector<16x128xf32>
    tpu.vector_store %arg2[%c0_8, %c0_9], %45 {strides = array<i32>} : memref<16x128xf32, #tpu.memory_space<vmem>>, vector<16x128xf32>,
    return
  }
  func.func @transform_0(%arg0: i32) -> (i32, i32) {
    %c0_i32 = arith.constant 0 : i32
    %c0_i32_0 = arith.constant 0 : i32
    return %arg0, %c0_i32 : i32, i32
  }
  func.func @transform_1(%arg0: i32) -> (i32, i32) {
    %c0_i32 = arith.constant 0 : i32
    %c0_i32_0 = arith.constant 0 : i32
    return %arg0, %c0_i32 : i32, i32
  }
}

</mosaic_0001>

<bundles_post_ra>
// kernel: tpu_custom_call.1
= control target key start
LH: loop header
LB: loop body
LE: loop exit
PB: predicated region body
PF: predicated region fallthrough
CT: control target
= control target key end

     0   :  { %6 = vsyncpa [#allocation3], 0  ;;  %s212_s0 = inlined_call_operand.hbm [shape: f32[16,128], index: 0, kind: input, shape index: {}]   ;;  %s213_s1 = inlined_call_operand.hbm [shape: f32[16,128], index: 1, kind: output, shape index: {}]  }
   0x1   :  { %7 = vsyncpa [#allocation4], 0  ;;  %s177_s6 = smov [#allocation2]  }
   0x2   :  { %s13_s7 = sshll.u32 %s177_s6, 4  ;;  %s14_s7 = int_to_ptr.vmem [resolvable:$true] %s13_s7 }
   0x3   :  { %s141_s8 = scalar_lea.vmem %s14_s7, 256  ;;  %p146_p1 = scmp.lt.s32.totalorder %s14_s7, %s14_s7 }
   0x4   :  { %p142_p0 = scmp.ne.s32.totalorder %s14_s7, %s141_s8  ;;  %p147_p2 = scmp.lt.s32.totalorder %s141_s8, %s141_s8 }
   0x6   :  { %p148_p3 = por %p147_p2, %p146_p1 }
   0x8   :  { %p149_p4 = pnand %p148_p3, %p142_p0 }
   0xa   :  { %152 = shalt.err (!%p149_p4)
}
   0xb   :  { %s178_s9 = smov 128   ;;  %s179_s10 = smov 8  }
   0xc   :  { %19 = dma.hbm_to_vmem [thread:$0]  %s212_s0, 256, %s14_s7, [#allocation3], %s178_s9, %s178_s9, %s179_s10  }
   0xd   :  { %173 = dma.done.wait [#allocation3], 256  }
   0xe   :  { %174 = vsyncadd [#allocation3], 4294967040  ;;  %v23_v0 = vld [vmem:[#allocation2] sm:$0xff]  ;;  %s180_s13 = smov 15   ;;  %s181_s14 = smov 127   ;;  %v24_v1 = vld [vmem:[#allocation2 + $0x8] sm:$0xff]  ;;  %v25_v2 = vlaneseq }
   0xf   :  { %43 = vrot.lane.b32.xlu1 %v23_v0, %s180_s13  ;;  %39 = vrot.lane.b32.xlu0 %v23_v0, %s181_s14  ;;  %s182_s0 = smov 126   ;;  %s183_s15 = smov 14  }
  0x10   :  { %v26_v3 = vand.u32 127, %v25_v2  ;;  %s184_s16 = smov 124   ;;  %s185_s17 = smov 12  }
  0x11   :  { %s186_s18 = smov 120   ;;  %s187_s19 = smov [#allocation5]  }
  0x12   :  { %v31_v4 = vand.u32 15, %v26_v3  ;;  %s104_s20 = sshll.u32 %s187_s19, 4  ;;  %s105_s20 = int_to_ptr.vmem [resolvable:$true] %s104_s20 }
  0x13   :  { %45 = vrot.lane.b32.xlu1 %v24_v1, %s180_s13  ;;  %41 = vrot.lane.b32.xlu0 %v24_v1, %s181_s14  ;;  %s153_s21 = scalar_lea.vmem %s105_s20, 256  ;;  %p158_p6 = scmp.lt.s32.totalorder %s105_s20, %s105_s20 }
  0x14   :  { %vm47_vm0 = vcmp.lt.s32.totalorder %v31_v4, 15  ;;  %vm60_vm1 = vcmp.lt.s32.totalorder %v31_v4, 14  ;;  %vm73_vm2 = vcmp.lt.s32.totalorder %v31_v4, 12  ;;  %vm86_vm3 = vcmp.lt.s32.totalorder %v31_v4, 8  ;;  %p154_p5 = scmp.ne.s32.totalorder %s105_s20, %s153_s21  ;;  %p159_p7 = scmp.lt.s32.totalorder %s153_s21, %s153_s21 }
  0x16   :  { %p160_p8 = por %p159_p7, %p158_p6 }
  0x18   :  { %p161_p9 = pnand %p160_p8, %p154_p5 }
  0x81   :  { %v44_v5 = vpop.permute.xlu1 %43  ;;  %v40_v6 = vpop.permute.xlu0 %39 }
  0x82   :  { %v48_v7 = vsel %vm47_vm0, %v40_v6, %v44_v5 }
  0x83   :  { %v50_v8 = vmax.f32 %v23_v0, %v48_v7 }
  0x85   :  { %v46_v9 = vpop.permute.xlu1 %45  ;;  %52 = vrot.lane.b32.xlu0 %v50_v8, %s182_s0  ;;  %v42_v10 = vpop.permute.xlu0 %41 }
  0x86   :  { %v49_v11 = vsel %vm47_vm0, %v42_v10, %v46_v9 }
  0x87   :  { %v51_v12 = vmax.f32 %v24_v1, %v49_v11 }
  0x89   :  { %56 = vrot.lane.b32.xlu0 %v50_v8, %s183_s15  ;;  %54 = vrot.lane.b32.xlu1 %v51_v12, %s182_s0 }
  0x8d   :  { %58 = vrot.lane.b32.xlu1 %v51_v12, %s183_s15 }
  0xf7   :  { %v53_v13 = vpop.permute.xlu0 %52 }
  0xfb   :  { %v55_v14 = vpop.permute.xlu1 %54  ;;  %v57_v15 = vpop.permute.xlu0 %56 }
  0xfc   :  { %v61_v16 = vsel %vm60_vm1, %v53_v13, %v57_v15 }
  0xfd   :  { %v63_v17 = vmax.f32 %v50_v8, %v61_v16 }
  0xff   :  { %v59_v18 = vpop.permute.xlu1 %58  ;;  %65 = vrot.lane.b32.xlu0 %v63_v17, %s184_s16 }
 0x100   :  { %v62_v19 = vsel %vm60_vm1, %v55_v14, %v59_v18 }
 0x101   :  { %v64_v20 = vmax.f32 %v51_v12, %v62_v19 }
 0x103   :  { %67 = vrot.lane.b32.xlu1 %v64_v20, %s184_s16  ;;  %69 = vrot.lane.b32.xlu0 %v63_v17, %s185_s17 }
 0x107   :  { %71 = vrot.lane.b32.xlu1 %v64_v20, %s185_s17 }
 0x171   :  { %v66_v21 = vpop.permute.xlu0 %65 }
 0x175   :  { %v68_v22 = vpop.permute.xlu1 %67  ;;  %v70_v23 = vpop.permute.xlu0 %69 }
 0x176   :  { %v74_v24 = vsel %vm73_vm2, %v66_v21, %v70_v23 }
 0x177   :  { %v76_v25 = vmax.f32 %v63_v17, %v74_v24 }
 0x179   :  { %v72_v26 = vpop.permute.xlu1 %71  ;;  %78 = vrot.lane.b32.xlu0 %v76_v25, %s186_s18 }
 0x17a   :  { %v75_v27 = vsel %vm73_vm2, %v68_v22, %v72_v26 }
 0x17b   :  { %v77_v28 = vmax.f32 %v64_v20, %v75_v27 }
 0x17d   :  { %80 = vrot.lane.b32.xlu1 %v77_v28, %s186_s18  ;;  %82 = vrot.lane.b32.xlu0 %v76_v25, %s179_s10 }
 0x181   :  { %84 = vrot.lane.b32.xlu1 %v77_v28, %s179_s10 }
 0x1eb   :  { %v79_v29 = vpop.permute.xlu0 %78 }
 0x1ef   :  { %v81_v30 = vpop.permute.xlu1 %80  ;;  %v83_v31 = vpop.permute.xlu0 %82 }
 0x1f0   :  { %v87_v32 = vsel %vm86_vm3, %v79_v29, %v83_v31 }
 0x1f1   :  { %v89_v33 = vmax.f32 %v76_v25, %v87_v32 }
 0x1f3   :  { %v91_v34 = vsub.f32 %v23_v0, %v89_v33  ;;  %v85_v35 = vpop.permute.xlu1 %84 }
 0x1f4   :  { %v88_v36 = vsel %vm86_vm3, %v81_v30, %v85_v35 }
 0x1f5   :  { %v116_v37 = vadd.f32 -9.965784, %v91_v34  ;;  %v90_v38 = vmax.f32 %v77_v28, %v88_v36 }
 0x1f7   :  { %129 = vpow2.f32 %v116_v37  ;;  %v92_v39 = vsub.f32 %v24_v1, %v90_v38 }
 0x1f9   :  { %v117_v40 = vadd.f32 -9.965784, %v92_v39 }
 0x1fb   :  { %131 = vpow2.f32 %v117_v40 }
 0x204   :  { %v130_v41 = vpop.eup %129 }
 0x205   :  { %97 = vst [vmem:[#allocation5] sm:$0xff] %v130_v41 }
 0x208   :  { %v132_v42 = vpop.eup %131 }
 0x209   :  { %98 = vst [vmem:[#allocation5 + $0x8] sm:$0xff] %v132_v42 }
 0x20a   :  { %164 = shalt.err (!%p161_p9)
}
 0x20b   :  { %110 = dma.vmem_to_hbm [thread:$0]  %s105_s20, 256, %s213_s1, [#allocation4], %s178_s9, %s178_s9, %s179_s10  }
 0x20c   :  { %175 = dma.done.wait [#allocation4], 256  }
 0x20d   :  { %176 = vsyncadd [#allocation4], 4294967040 }
 0x20e   :  { %114 = vsyncpa [#allocation3], 1 }
 0x20f   :  { %115 = vsyncpa [#allocation4], 1 }

</bundles_post_ra>
